<compile_context>
chip_gen: v5e
topology: v5e:2x2
jax: 0.10.0
libtpu: 0.0.40
codegen_flags: <defaults>
</compile_context>

<pallas_src>
import functools

import jax
import jax.numpy as jnp
from jax.experimental import pallas as pl
from jax.experimental.pallas import tpu as pltpu

NEG_SLOPE = 0.2
LAYER_DIMS = [(2, 100), (100, 50), (50, 30), (30, 1)]   # (in, out) per layer


def _leaky_relu(x, slope=NEG_SLOPE):
    # Valid for 0 < slope < 1: max(x, slope*x) == leaky_relu(x).
    return jnp.maximum(x, slope * x)


def _round_up(x, m):
    return (x + m - 1) // m * m


def _cdiv(a, b):
    return -(-a // b)


def discriminator_kernel(z_ref,
                         w1_ref, b1_ref,
                         w2_ref, b2_ref,
                         w3_ref, b3_ref,
                         w4t_ref, b4_ref,
                         out_ref):
    # z_ref: (2, TB) -- batch on lanes, features on sublanes.
    z = z_ref[...]
    w1 = w1_ref[...]                                   # (100, 2)

    # Layer 1: K=2 contraction -> two VPU broadcast multiply-adds (an MXU
    # matmul would use 2/256 of the contraction dim: pure push/pop latency).
    h = w1[:, 0:1] * z[0:1, :] + w1[:, 1:2] * z[1:2, :] + b1_ref[...]
    h = _leaky_relu(h)                                 # (100, TB)

    # Layers 2-3: MXU matmuls; weights are VMEM-resident across grid steps.
    # (Default matmul precision kept: verified within 1e-4 of the f32 ref.)
    h = jnp.dot(w2_ref[...], h, preferred_element_type=jnp.float32) + b2_ref[...]
    h = _leaky_relu(h)                                 # (50, TB)

    h = jnp.dot(w3_ref[...], h, preferred_element_type=jnp.float32) + b3_ref[...]
    h = _leaky_relu(h)                                 # (30, TB)

    # Layer 4 (out_features=1): VPU broadcast-multiply + sublane reduce
    # instead of an M=1 MXU matmul (saves a weight push/pop per step).
    o = jnp.sum(w4t_ref[...] * h, axis=0, keepdims=True) + b4_ref[...]
    out_ref[...] = jax.nn.sigmoid(o).astype(out_ref.dtype)   # (1, TB) lane-dense


def _choose_tiles(B, block_b):
    """Pick (tile, n_steps) with n_steps*tile >= B, tile a multiple of 128.

    * Tile capped at 8192 so the per-step VMEM peak (~6-7 MiB: double-buffered
      z/out + (100/50/30, TB) f32 intermediates + weights) stays under v5e's
      16 MiB default scoped-VMEM limit (and well under v6e/v7x limits).
    * n_steps chosen first, then tile = round_up(cdiv(B, n_steps), 128), so
      padding waste is bounded by n_steps*127 instead of a whole tile.
    * For B > 256 use an even n_steps >= 2 so the "parallel" batch axis can be
      split across both TensorCores on v7x.
    """
    tb_cap = max(128, _round_up(min(block_b, 8192), 128))
    if B <= 128:
        return 128, 1
    n = _cdiv(B, tb_cap)
    if B > 256:
        n = max(n, 2)
        n += n % 2                   # even step count -> balanced megacore split
    tb = _round_up(_cdiv(B, n), 128)
    return tb, n


@functools.partial(jax.jit, static_argnames=("block_b",))
def discriminator_forward(z, params, *, block_b=8192):
    """z: (B, 2) float32.  params: PyTorch-layout weights (out,in), biases (out,)."""
    B = z.shape[0]
    TB, n_steps = _choose_tiles(B, block_b)
    B_pad = TB * n_steps

    # Present z lane-dense: (2, B_pad) with batch on the lane axis.
    z_pad = jnp.zeros((B_pad, 2), jnp.float32).at[:B, :].set(z.astype(jnp.float32))
    z_t = z_pad.T

    operands = (
        z_t,
        params["w1"], params["b1"].reshape(-1, 1),     # (100,2), (100,1)
        params["w2"], params["b2"].reshape(-1, 1),     # (50,100), (50,1)
        params["w3"], params["b3"].reshape(-1, 1),     # (30,50),  (30,1)
        params["w4"].T, params["b4"].reshape(1, 1),    # (30,1),   (1,1)  pre-transposed
    )

    # z tile walks the batch; every weight/bias keeps a constant block index so
    # it is fetched once and stays resident in VMEM across all grid steps.
    in_specs = [pl.BlockSpec((2, TB), lambda i: (0, i))]
    for op in operands[1:]:
        in_specs.append(pl.BlockSpec(op.shape, lambda i: (0, 0)))
    out_spec = pl.BlockSpec((1, TB), lambda i: (0, i))

    out_t = pl.pallas_call(
        discriminator_kernel,
        out_shape=jax.ShapeDtypeStruct((1, B_pad), jnp.float32),
        grid=(n_steps,),
        in_specs=in_specs,
        out_specs=out_spec,
        compiler_params=pltpu.CompilerParams(
            dimension_semantics=("parallel",)),        # megacore sharding on v7x
    )(*operands)

    return out_t[:, :B].T                              # (B, 1)


def init_params(key):
    """PyTorch nn.Linear default init (weight_init in the original module only
    touches Conv/BatchNorm layers, so the Linear layers keep the default).
    Weights stored PyTorch-style as (out_features, in_features)."""
    params = {}
    for idx, (fin, fout) in enumerate(LAYER_DIMS, start=1):
        key, kw, kb = jax.random.split(key, 3)
        bound = 1.0 / float(fin) ** 0.5
        params[f"w{idx}"] = jax.random.uniform(
            kw, (fout, fin), jnp.float32, minval=-bound, maxval=bound)
        params[f"b{idx}"] = jax.random.uniform(
            kb, (fout,), jnp.float32, minval=-bound, maxval=bound)
    return params


def reference_forward(z, params):
    h = z
    for idx in (1, 2, 3):
        h = jnp.where(h @ params[f"w{idx}"].T + params[f"b{idx}"] > 0,
                      h @ params[f"w{idx}"].T + params[f"b{idx}"],
                      NEG_SLOPE * (h @ params[f"w{idx}"].T + params[f"b{idx}"]))
    h = h @ params["w4"].T + params["b4"]
    return jax.nn.sigmoid(h)


if __name__ == "__main__":
    key = jax.random.PRNGKey(0)
    key, kz1, kz2 = jax.random.split(key, 3)
    params = init_params(key)

    # Small batch (latent dim = 2, as in the PyTorch module): grid=(1,).
    B = 8
    z = jax.random.normal(kz1, (B, 2), jnp.float32)
    out = jax.block_until_ready(discriminator_forward(z, params))
    ref = reference_forward(z, params)
    assert out.shape == (B, 1)
    assert jnp.allclose(out, ref, atol=1e-4, rtol=1e-4), (
        float(jnp.max(jnp.abs(out - ref))))

    # Ragged batch, small tile forcing multiple grid steps (grid=(4,)).
    B2 = 300
    z2 = jax.random.normal(kz2, (B2, 2), jnp.float32)
    out2 = jax.block_until_ready(discriminator_forward(z2, params, block_b=128))
    ref2 = reference_forward(z2, params)
    assert out2.shape == (B2, 1)
    assert jnp.allclose(out2, ref2, atol=1e-4, rtol=1e-4), (
        float(jnp.max(jnp.abs(out2 - ref2))))

    # Same ragged batch through the default large-tile path: even 2-step grid
    # (exercises the megacore-friendly tile selection + decoupled padding).
    out3 = jax.block_until_ready(discriminator_forward(z2, params))
    assert out3.shape == (B2, 1)
    assert jnp.allclose(out3, ref2, atol=1e-4, rtol=1e-4), (
        float(jnp.max(jnp.abs(out3 - ref2))))

    print("KERNEL_OK")
</pallas_src>

<mosaic_0001>
module attributes {stable_mosaic.version = 11 : i64} {
  func.func @discriminator_kernel(%arg0: i32, %arg1: memref<2x128xf32, #tpu.memory_space<vmem>>, %arg2: memref<100x2xf32, #tpu.memory_space<vmem>>, %arg3: memref<100x1xf32, #tpu.memory_space<vmem>>, %arg4: memref<50x100xf32, #tpu.memory_space<vmem>>, %arg5: memref<50x1xf32, #tpu.memory_space<vmem>>, %arg6: memref<30x50xf32, #tpu.memory_space<vmem>>, %arg7: memref<30x1xf32, #tpu.memory_space<vmem>>, %arg8: memref<30x1xf32, #tpu.memory_space<vmem>>, %arg9: memref<1x1xf32, #tpu.memory_space<vmem>>, %arg10: memref<1x128xf32, #tpu.memory_space<vmem>>) attributes {dimension_semantics = [#tpu.dimension_semantics<parallel>], iteration_bounds = array<i64: 1>, scalar_prefetch = 0 : i64, scratch_operands = 0 : i64, tpu.core_type = #tpu.core_type<tc>, window_params = [{transform_indices = @transform_0, window_bounds = array<i64: 2, 128>}, {pipeline_mode = #tpu.pipeline_mode<synchronous>, transform_indices = @transform_1, window_bounds = array<i64: 100, 2>}, {pipeline_mode = #tpu.pipeline_mode<synchronous>, transform_indices = @transform_2, window_bounds = array<i64: 100, 1>}, {pipeline_mode = #tpu.pipeline_mode<synchronous>, transform_indices = @transform_3, window_bounds = array<i64: 50, 100>}, {pipeline_mode = #tpu.pipeline_mode<synchronous>, transform_indices = @transform_4, window_bounds = array<i64: 50, 1>}, {pipeline_mode = #tpu.pipeline_mode<synchronous>, transform_indices = @transform_5, window_bounds = array<i64: 30, 50>}, {pipeline_mode = #tpu.pipeline_mode<synchronous>, transform_indices = @transform_6, window_bounds = array<i64: 30, 1>}, {pipeline_mode = #tpu.pipeline_mode<synchronous>, transform_indices = @transform_7, window_bounds = array<i64: 30, 1>}, {pipeline_mode = #tpu.pipeline_mode<synchronous>, transform_indices = @transform_8, window_bounds = array<i64: 1, 1>}, {transform_indices = @transform_9, window_bounds = array<i64: 1, 128>}]} {
    %c0 = arith.constant 0 : index
    %c0_0 = arith.constant 0 : index
    %0 = vector.load %arg1[%c0, %c0_0] : memref<2x128xf32, #tpu.memory_space<vmem>>, vector<2x128xf32>
    %c0_1 = arith.constant 0 : index
    %c0_2 = arith.constant 0 : index
    %1 = vector.load %arg2[%c0_1, %c0_2] : memref<100x2xf32, #tpu.memory_space<vmem>>, vector<100x2xf32>
    %2 = vector.extract_strided_slice %1 {offsets = [0, 0], sizes = [100, 1], strides = [1, 1]} : vector<100x2xf32> to vector<100x1xf32>
    %3 = vector.extract_strided_slice %0 {offsets = [0, 0], sizes = [1, 128], strides = [1, 1]} : vector<2x128xf32> to vector<1x128xf32>
    %4 = vector.broadcast %2 : vector<100x1xf32> to vector<100x128xf32>
    %5 = vector.broadcast %3 : vector<1x128xf32> to vector<100x128xf32>
    %6 = arith.mulf %4, %5 : vector<100x128xf32>
    %7 = vector.extract_strided_slice %1 {offsets = [0, 1], sizes = [100, 1], strides = [1, 1]} : vector<100x2xf32> to vector<100x1xf32>
    %8 = vector.extract_strided_slice %0 {offsets = [1, 0], sizes = [1, 128], strides = [1, 1]} : vector<2x128xf32> to vector<1x128xf32>
    %9 = vector.broadcast %7 : vector<100x1xf32> to vector<100x128xf32>
    %10 = vector.broadcast %8 : vector<1x128xf32> to vector<100x128xf32>
    %11 = arith.mulf %9, %10 : vector<100x128xf32>
    %12 = arith.addf %6, %11 : vector<100x128xf32>
    %c0_3 = arith.constant 0 : index
    %c0_4 = arith.constant 0 : index
    %13 = vector.load %arg3[%c0_3, %c0_4] : memref<100x1xf32, #tpu.memory_space<vmem>>, vector<100x1xf32>
    %14 = vector.broadcast %13 : vector<100x1xf32> to vector<100x128xf32>
    %15 = arith.addf %12, %14 : vector<100x128xf32>
    %cst = arith.constant 2.000000e-01 : f32
    %16 = vector.broadcast %cst : f32 to vector<100x128xf32>
    %17 = arith.mulf %16, %15 : vector<100x128xf32>
    %18 = arith.maximumf %15, %17 : vector<100x128xf32>
    %c0_5 = arith.constant 0 : index
    %c0_6 = arith.constant 0 : index
    %19 = vector.load %arg4[%c0_5, %c0_6] : memref<50x100xf32, #tpu.memory_space<vmem>>, vector<50x100xf32>
    %cst_7 = arith.constant dense<0.000000e+00> : vector<50x128xf32>
    %20 = tpu.matmul %19, %18, %cst_7 {dimension_numbers = #tpu.dot_dimension_numbers<[1], [0], [0], [1], [0, 0, 1, 1], [], []>} : vector<50x100xf32>, vector<100x128xf32>, vector<50x128xf32> -> vector<50x128xf32>
    %c0_8 = arith.constant 0 : index
    %c0_9 = arith.constant 0 : index
    %21 = vector.load %arg5[%c0_8, %c0_9] : memref<50x1xf32, #tpu.memory_space<vmem>>, vector<50x1xf32>
    %22 = vector.broadcast %21 : vector<50x1xf32> to vector<50x128xf32>
    %23 = arith.addf %20, %22 : vector<50x128xf32>
    %cst_10 = arith.constant 2.000000e-01 : f32
    %24 = vector.broadcast %cst_10 : f32 to vector<50x128xf32>
    %25 = arith.mulf %24, %23 : vector<50x128xf32>
    %26 = arith.maximumf %23, %25 : vector<50x128xf32>
    %c0_11 = arith.constant 0 : index
    %c0_12 = arith.constant 0 : index
    %27 = vector.load %arg6[%c0_11, %c0_12] : memref<30x50xf32, #tpu.memory_space<vmem>>, vector<30x50xf32>
    %cst_13 = arith.constant dense<0.000000e+00> : vector<30x128xf32>
    %28 = tpu.matmul %27, %26, %cst_13 {dimension_numbers = #tpu.dot_dimension_numbers<[1], [0], [0], [1], [0, 0, 1, 1], [], []>} : vector<30x50xf32>, vector<50x128xf32>, vector<30x128xf32> -> vector<30x128xf32>
    %c0_14 = arith.constant 0 : index
    %c0_15 = arith.constant 0 : index
    %29 = vector.load %arg7[%c0_14, %c0_15] : memref<30x1xf32, #tpu.memory_space<vmem>>, vector<30x1xf32>
    %30 = vector.broadcast %29 : vector<30x1xf32> to vector<30x128xf32>
    %31 = arith.addf %28, %30 : vector<30x128xf32>
    %cst_16 = arith.constant 2.000000e-01 : f32
    %32 = vector.broadcast %cst_16 : f32 to vector<30x128xf32>
    %33 = arith.mulf %32, %31 : vector<30x128xf32>
    %34 = arith.maximumf %31, %33 : vector<30x128xf32>
    %c0_17 = arith.constant 0 : index
    %c0_18 = arith.constant 0 : index
    %35 = vector.load %arg8[%c0_17, %c0_18] : memref<30x1xf32, #tpu.memory_space<vmem>>, vector<30x1xf32>
    %36 = vector.broadcast %35 : vector<30x1xf32> to vector<30x128xf32>
    %37 = arith.mulf %36, %34 : vector<30x128xf32>
    %cst_19 = arith.constant dense<0.000000e+00> : vector<128xf32>
    %38 = vector.multi_reduction <add>, %37, %cst_19 [0] : vector<30x128xf32> to vector<128xf32>
    %39 = vector.shape_cast %38 : vector<128xf32> to vector<1x128xf32>
    %c0_20 = arith.constant 0 : index
    %c0_21 = arith.constant 0 : index
    %40 = vector.load %arg9[%c0_20, %c0_21] : memref<1x1xf32, #tpu.memory_space<vmem>>, vector<1x1xf32>
    %41 = vector.broadcast %40 : vector<1x1xf32> to vector<1x128xf32>
    %42 = arith.addf %39, %41 : vector<1x128xf32>
    %43 = arith.negf %42 : vector<1x128xf32>
    %44 = math.exp %43 : vector<1x128xf32>
    %cst_22 = arith.constant 1.000000e+00 : f32
    %45 = vector.broadcast %cst_22 : f32 to vector<1x128xf32>
    %46 = arith.addf %45, %44 : vector<1x128xf32>
    %47 = arith.divf %45, %46 : vector<1x128xf32>
    %c0_23 = arith.constant 0 : index
    %c0_24 = arith.constant 0 : index
    %48 = vector.load %arg10[%c0_23, %c0_24] : memref<1x128xf32, #tpu.memory_space<vmem>>, vector<1x128xf32>
    tpu.vector_store %arg10[%c0_23, %c0_24], %47 {strides = array<i32>} : memref<1x128xf32, #tpu.memory_space<vmem>>, vector<1x128xf32>,
    return
  }
  func.func @transform_0(%arg0: i32) -> (i32, i32) {
    %c0_i32 = arith.constant 0 : i32
    %c0_i32_0 = arith.constant 0 : i32
    return %c0_i32, %arg0 : i32, i32
  }
  func.func @transform_1(%arg0: i32) -> (i32, i32) {
    %c0_i32 = arith.constant 0 : i32
    %c0_i32_0 = arith.constant 0 : i32
    %c0_i32_1 = arith.constant 0 : i32
    return %c0_i32, %c0_i32_0 : i32, i32
  }
  func.func @transform_2(%arg0: i32) -> (i32, i32) {
    %c0_i32 = arith.constant 0 : i32
    %c0_i32_0 = arith.constant 0 : i32
    %c0_i32_1 = arith.constant 0 : i32
    return %c0_i32, %c0_i32_0 : i32, i32
  }
  func.func @transform_3(%arg0: i32) -> (i32, i32) {
    %c0_i32 = arith.constant 0 : i32
    %c0_i32_0 = arith.constant 0 : i32
    %c0_i32_1 = arith.constant 0 : i32
    return %c0_i32, %c0_i32_0 : i32, i32
  }
  func.func @transform_4(%arg0: i32) -> (i32, i32) {
    %c0_i32 = arith.constant 0 : i32
    %c0_i32_0 = arith.constant 0 : i32
    %c0_i32_1 = arith.constant 0 : i32
    return %c0_i32, %c0_i32_0 : i32, i32
  }
  func.func @transform_5(%arg0: i32) -> (i32, i32) {
    %c0_i32 = arith.constant 0 : i32
    %c0_i32_0 = arith.constant 0 : i32
    %c0_i32_1 = arith.constant 0 : i32
    return %c0_i32, %c0_i32_0 : i32, i32
  }
  func.func @transform_6(%arg0: i32) -> (i32, i32) {
    %c0_i32 = arith.constant 0 : i32
    %c0_i32_0 = arith.constant 0 : i32
    %c0_i32_1 = arith.constant 0 : i32
    return %c0_i32, %c0_i32_0 : i32, i32
  }
  func.func @transform_7(%arg0: i32) -> (i32, i32) {
    %c0_i32 = arith.constant 0 : i32
    %c0_i32_0 = arith.constant 0 : i32
    %c0_i32_1 = arith.constant 0 : i32
    return %c0_i32, %c0_i32_0 : i32, i32
  }
  func.func @transform_8(%arg0: i32) -> (i32, i32) {
    %c0_i32 = arith.constant 0 : i32
    %c0_i32_0 = arith.constant 0 : i32
    %c0_i32_1 = arith.constant 0 : i32
    return %c0_i32, %c0_i32_0 : i32, i32
  }
  func.func @transform_9(%arg0: i32) -> (i32, i32) {
    %c0_i32 = arith.constant 0 : i32
    %c0_i32_0 = arith.constant 0 : i32
    return %c0_i32, %arg0 : i32, i32
  }
}

</mosaic_0001>

<bundles_post_ra>
// kernel: discriminator_forward.1
= control target key start
LH: loop header
LB: loop body
LE: loop exit
PB: predicated region body
PF: predicated region fallthrough
CT: control target
= control target key end

     0   :  { %v658_v0 = vmov 0   ;;  %v659_v4 = vmov 1   ;;  %vm394_vm0 = vcmask 1043456   ;;  %vm372_vm1 = vcmask 818176   ;;  %s933_s1 = inlined_call_operand.vmem [shape: f32[100,2], index: 1, kind: input, shape index: {}]   ;;  %s934_s2 = inlined_call_operand.vmem [shape: f32[100,1], index: 2, kind: input, shape index: {}]   ;;  %s935_s4 = inlined_call_operand.vmem [shape: f32[50,1], index: 4, kind: input, shape index: {}]   ;;  %s936_s8 = inlined_call_operand.<no memory space> [shape: f32[1,1], index: 8, kind: input, shape index: {}]   ;;  %s937_s6 = inlined_call_operand.vmem [shape: f32[30,1], index: 6, kind: input, shape index: {}]   ;;  %s938_s0 = inlined_call_operand.vmem [shape: f32[2,128], index: 0, kind: input, shape index: {}]   ;;  %s939_s7 = inlined_call_operand.vmem [shape: f32[30,1], index: 7, kind: input, shape index: {}]   ;;  %s940_s3 = inlined_call_operand.vmem [shape: f32[50,100], index: 3, kind: input, shape index: {}]   ;;  %s941_s5 = inlined_call_operand.vmem [shape: f32[30,50], index: 5, kind: input, shape index: {}]   ;;  %s942_s9 = inlined_call_operand.vmem [shape: f32[1,128], index: 9, kind: output, shape index: {}]  }
   0x1   :  { %649 = vset.pattern.permute.xlu2 %v658_v0  ;;  %647 = vset.pattern.permute.xlu1 %v658_v0  ;;  %v47_v1 = vld [vmem:[%s933_s1 + $0x60] sm:$0xf]  ;;  %v46_v2 = vld [vmem:[%s933_s1 + $0x58] sm:$0xff]  ;;  %v45_v3 = vld [vmem:[%s933_s1 + $0x50] sm:$0xff]  ;;  %v14_v33 = vstv %s936_s8  ;;  %vm491_vm2 = vcmask 1041408   ;;  %vm478_vm3 = vcmask 408576  }
   0x2   :  { %645 = vset.pattern.permute.xlu0 %v658_v0  ;;  %105 = vperm.xlu1 %647, %v46_v2   ;;  %v44_v5 = vld [vmem:[%s933_s1 + $0x48] sm:$0xff]  ;;  %v218_v6 = vld [vmem:[%s934_s2 + $0x60] sm:$0xf]  ;;  %v217_v8 = vld [vmem:[%s934_s2 + $0x58] sm:$0xff]  ;;  %15 = vst [vmem:[#allocation2] sm:$0x1] %v14_v33 }
   0x3   :  { %110 = vperm.xlu0 %645, %v47_v1   ;;  %100 = vperm.xlu2 %649, %v45_v3   ;;  %v43_v7 = vld [vmem:[%s933_s1 + $0x40] sm:$0xff]  ;;  %v42_v9 = vld [vmem:[%s933_s1 + $0x38] sm:$0xff]  ;;  %v216_v10 = vld [vmem:[%s934_s2 + $0x50] sm:$0xff]  ;;  %vm562_vm4 = vcmask 1045504  }
   0x4   :  { %v41_v11 = vld [vmem:[%s933_s1 + $0x30] sm:$0xff]  ;;  %v215_v12 = vld [vmem:[%s934_s2 + $0x48] sm:$0xff]  ;;  %v214_v14 = vld [vmem:[%s934_s2 + $0x40] sm:$0xff] }
   0x5   :  { %v40_v13 = vld [vmem:[%s933_s1 + $0x28] sm:$0xff]  ;;  %v39_v15 = vld [vmem:[%s933_s1 + $0x20] sm:$0xff]  ;;  %v213_v16 = vld [vmem:[%s934_s2 + $0x38] sm:$0xff] }
   0x6   :  { %v38_v17 = vld [vmem:[%s933_s1 + $0x18] sm:$0xff]  ;;  %v212_v18 = vld [vmem:[%s934_s2 + $0x30] sm:$0xff]  ;;  %v211_v20 = vld [vmem:[%s934_s2 + $0x28] sm:$0xff] }
   0x7   :  { %v37_v19 = vld [vmem:[%s933_s1 + $0x10] sm:$0xff]  ;;  %v36_v21 = vld [vmem:[%s933_s1 + $0x8] sm:$0xff]  ;;  %v210_v22 = vld [vmem:[%s934_s2 + $0x20] sm:$0xff] }
   0x8   :  { %v35_v23 = vld [vmem:[%s933_s1] sm:$0xff]  ;;  %v209_v24 = vld [vmem:[%s934_s2 + $0x18] sm:$0xff]  ;;  %v208_v26 = vld [vmem:[%s934_s2 + $0x10] sm:$0xff] }
   0x9   :  { %v206_v27 = vld [vmem:[%s934_s2] sm:$0xff]  ;;  %v207_v28 = vld [vmem:[%s934_s2 + $0x8] sm:$0xff]  ;;  %v336_v30 = vld [vmem:[%s935_s4 + $0x30] sm:$0x3] }
   0xa   :  { %648 = vset.pattern.permute.xlu1 %v659_v4  ;;  %v332_v31 = vld [vmem:[%s935_s4 + $0x10] sm:$0xff]  ;;  %v335_v32 = vld [vmem:[%s935_s4 + $0x28] sm:$0xff]  ;;  %v334_v35 = vld [vmem:[%s935_s4 + $0x20] sm:$0xff] }
   0xb   :  { %646 = vset.pattern.permute.xlu0 %v659_v4  ;;  %650 = vset.pattern.permute.xlu2 %v659_v4  ;;  %v454_v36 = vld [vmem:[%s937_s6] sm:$0xff]  ;;  %v333_v37 = vld [vmem:[%s935_s4 + $0x18] sm:$0xff]  ;;  %v331_v40 = vld [vmem:[%s935_s4 + $0x8] sm:$0xff] }
   0xc   :  { %176 = vperm.xlu0 %646, %v47_v1   ;;  %172 = vperm.xlu1 %648, %v46_v2   ;;  %v457_v41 = vld [vmem:[%s937_s6 + $0x18] sm:$0x3f]  ;;  %v330_v43 = vld [vmem:[%s935_s4] sm:$0xff]  ;;  %v455_v50 = vld [vmem:[%s937_s6 + $0x8] sm:$0xff] }
   0xd   :  { %168 = vperm.xlu2 %650, %v45_v3   ;;  %v34_v46 = vld [vmem:[%s938_s0] sm:$0x3]  ;;  %v534_v51 = vld [vmem:[%s939_s7 + $0x10] sm:$0xff]  ;;  %v533_v62 = vld [vmem:[%s939_s7 + $0x8] sm:$0xff] }
   0xe   :  { %v835_v47 = vperm.slane %v34_v46, 1  ;;  %v837_v48 = vperm.slane %v34_v46, 0  ;;  %v456_v52 = vld [vmem:[%s937_s6 + $0x10] sm:$0xff]  ;;  %v532_v61 = vld [vmem:[%s939_s7] sm:$0xff] }
  0x14   :  { %651 = vset.pattern.permute.xlu1 %v658_v0  ;;  %164 = vperm.xlu0 %646, %v44_v5  }
  0x15   :  { %652 = vset.pattern.permute.xlu2 %v658_v0  ;;  %281 = vperm.xlu1 %651, %v218_v6  }
  0x16   :  { %95 = vperm.xlu2 %652, %v44_v5  }
  0x1c   :  { %160 = vperm.xlu0 %646, %v43_v7  }
  0x1d   :  { %276 = vperm.xlu1 %651, %v217_v8  }
  0x1e   :  { %90 = vperm.xlu2 %652, %v43_v7  }
  0x24   :  { %156 = vperm.xlu0 %646, %v42_v9  }
  0x25   :  { %271 = vperm.xlu1 %651, %v216_v10   ;;  %v571_v10 = vld [vmem:[#allocation2] sm:$0x1] }
  0x26   :  { %85 = vperm.xlu2 %652, %v42_v9   ;;  %v535_v9 = vld [vmem:[%s939_s7 + $0x18] sm:$0x3f] }
  0x2c   :  { %152 = vperm.xlu0 %646, %v41_v11  }
  0x2d   :  { %266 = vperm.xlu1 %651, %v215_v12  }
  0x2e   :  { %80 = vperm.xlu2 %652, %v41_v11  }
  0x34   :  { %148 = vperm.xlu0 %646, %v40_v13  }
  0x35   :  { %261 = vperm.xlu1 %651, %v214_v14  }
  0x36   :  { %75 = vperm.xlu2 %652, %v40_v13  }
  0x3c   :  { %144 = vperm.xlu0 %646, %v39_v15  }
  0x3d   :  { %256 = vperm.xlu1 %651, %v213_v16  }
  0x3e   :  { %70 = vperm.xlu2 %652, %v39_v15  }
  0x44   :  { %140 = vperm.xlu0 %646, %v38_v17  }
  0x45   :  { %251 = vperm.xlu1 %651, %v212_v18  }
  0x46   :  { %65 = vperm.xlu2 %652, %v38_v17  }
  0x4c   :  { %136 = vperm.xlu0 %646, %v37_v19  }
  0x4d   :  { %246 = vperm.xlu1 %651, %v211_v20  }
  0x4e   :  { %60 = vperm.xlu2 %652, %v37_v19  }
  0x54   :  { %132 = vperm.xlu0 %646, %v36_v21  }
  0x55   :  { %241 = vperm.xlu1 %651, %v210_v22  }
  0x56   :  { %55 = vperm.xlu2 %652, %v36_v21  }
  0x5c   :  { %128 = vperm.xlu0 %646, %v35_v23  }
  0x5d   :  { %236 = vperm.xlu1 %651, %v209_v24   ;;  %v784_v25 = vpop.permute.xlu2 %100 }
  0x5e   :  { %50 = vperm.xlu2 %652, %v35_v23   ;;  %v124_v6 = vmul.f32 %v837_v48, %v784_v25 }
  0x64   :  { %653 = vset.pattern.permute.xlu0 %v658_v0 }
  0x65   :  { %231 = vperm.xlu1 %651, %v208_v26   ;;  %221 = vperm.xlu0 %653, %v206_v27  }
  0x66   :  { %226 = vperm.xlu2 %652, %v207_v28  }
  0x67   :  { %v796_v29 = vpop.permute.xlu2 %168 }
  0x68   :  { %v190_v7 = vmul.f32 %v835_v47, %v796_v29 }
  0x6a   :  { %v203_v13 = vadd.f32 %v190_v7, %v124_v6 }
  0x6d   :  { %369 = vperm.xlu1 %651, %v336_v30   ;;  %349 = vperm.xlu0 %653, %v332_v31  }
  0x6e   :  { %364 = vperm.xlu2 %652, %v335_v32  }
  0x70   :  { %v810_v34 = vpop.permute.xlu2 %95 }
  0x71   :  { %v123_v17 = vmul.f32 %v837_v48, %v810_v34 }
  0x74   :  { %v106_v38 = vpop.permute.xlu1 %105 }
  0x75   :  { %359 = vperm.xlu1 %651, %v334_v35   ;;  %460 = vperm.xlu0 %653, %v454_v36   ;;  %v111_v39 = vpop.permute.xlu0 %110  ;;  %v125_v63 = vmul.f32 %v837_v48, %v106_v38 }
  0x76   :  { %354 = vperm.xlu2 %652, %v333_v37   ;;  %v126_v53 = vmul.f32 %v837_v48, %v111_v39 }
  0x78   :  { %v827_v42 = vpop.permute.xlu2 %90 }
  0x79   :  { %v122_v28 = vmul.f32 %v837_v48, %v827_v42 }
  0x7d   :  { %344 = vperm.xlu1 %651, %v331_v40   ;;  %475 = vperm.xlu0 %653, %v457_v41  }
  0x7e   :  { %339 = vperm.xlu2 %652, %v330_v43   ;;  %v177_v44 = vpop.permute.xlu0 %176  ;;  %v173_v45 = vpop.permute.xlu1 %172 }
  0x7f   :  { %v192_v49 = vmul.f32 %v835_v47, %v177_v44  ;;  %v191_v59 = vmul.f32 %v835_v47, %v173_v45 }
  0x80   :  { %v850_v54 = vpop.permute.xlu2 %85 }
  0x81   :  { %v205_v56 = vadd.f32 %v192_v49, %v126_v53  ;;  %v204_v2 = vadd.f32 %v191_v59, %v125_v63  ;;  %v121_v36 = vmul.f32 %v837_v48, %v850_v54 }
  0x85   :  { %465 = vperm.xlu1 %651, %v455_v50   ;;  %548 = vperm.xlu0 %653, %v534_v51  }
  0x86   :  { %470 = vperm.xlu2 %652, %v456_v52   ;;  %v165_v55 = vpop.permute.xlu0 %164 }
  0x87   :  { %v282_v57 = vpop.permute.xlu1 %281  ;;  %v189_v18 = vmul.f32 %v835_v47, %v165_v55 }
  0x88   :  { %v296_v58 = vadd.f32 %v282_v57, %v205_v56  ;;  %v81_v3 = vpop.permute.xlu2 %80 }
  0x89   :  { %v202_v22 = vadd.f32 %v189_v18, %v123_v17  ;;  %v120_v45 = vmul.f32 %v837_v48, %v81_v3 }
  0x8a   :  { %v309_v60 = vmul.f32 0.2, %v296_v58 }
  0x8c   :  { %v322_v0 = vmax.f32 %v296_v58, %v309_v60 }
  0x8d   :  { %538 = vperm.xlu1 %651, %v532_v61  }
  0x8e   :  { %543 = vperm.xlu2 %652, %v533_v62   ;;  %v161_v1 = vpop.permute.xlu0 %160  ;;  %603 = vmatpush.msk.msra.mxu0 %vm394_vm0, %v322_v0 }
  0x8f   :  { %617 = vmatpush.msk.msra.mxu2 %vm394_vm0, %v322_v0  ;;  %618 = vmatpush.msk.msra.mxu3 %vm394_vm0, %v322_v0  ;;  %v277_v4 = vpop.permute.xlu1 %276  ;;  %v188_v25 = vmul.f32 %v835_v47, %v161_v1 }
  0x90   :  { %v295_v5 = vadd.f32 %v277_v4, %v204_v2  ;;  %v76_v16 = vpop.permute.xlu2 %75 }
  0x91   :  { %v201_v31 = vadd.f32 %v188_v25, %v122_v28  ;;  %v119_v56 = vmul.f32 %v837_v48, %v76_v16 }
  0x92   :  { %v308_v8 = vmul.f32 0.2, %v295_v5 }
  0x94   :  { %v321_v11 = vmax.f32 %v295_v5, %v308_v8 }
  0x95   :  { %553 = vperm.xlu1 %651, %v535_v9  }
  0x96   :  { %574 = vperm.xlu2 %652, %v571_v10   ;;  %v157_v12 = vpop.permute.xlu0 %156  ;;  %402 = vmatpush.msra.mxu0 %v321_v11 }
  0x97   :  { %619 = vmatpush.msra.mxu2 %v321_v11  ;;  %620 = vmatpush.msra.mxu3 %v321_v11  ;;  %v272_v14 = vpop.permute.xlu1 %271  ;;  %v187_v34 = vmul.f32 %v835_v47, %v157_v12 }
  0x98   :  { %v294_v15 = vadd.f32 %v272_v14, %v203_v13  ;;  %v71_v27 = vpop.permute.xlu2 %70 }
  0x99   :  { %v200_v40 = vadd.f32 %v187_v34, %v121_v36  ;;  %v118_v1 = vmul.f32 %v837_v48, %v71_v27 }
  0x9a   :  { %v307_v19 = vmul.f32 0.2, %v294_v15 }
  0x9c   :  { %v320_v20 = vmax.f32 %v294_v15, %v307_v19 }
  0x9e   :  { %v153_v21 = vpop.permute.xlu0 %152  ;;  %403 = vmatpush.msra.mxu0 %v320_v20  ;;  %621 = vmatpush.msra.mxu2 %v320_v20 }
  0x9f   :  { %622 = vmatpush.msra.mxu3 %v320_v20  ;;  %v267_v23 = vpop.permute.xlu1 %266  ;;  %v186_v43 = vmul.f32 %v835_v47, %v153_v21 }
  0xa0   :  { %v293_v24 = vadd.f32 %v267_v23, %v202_v22  ;;  %v66_v38 = vpop.permute.xlu2 %65 }
  0xa1   :  { %v199_v50 = vadd.f32 %v186_v43, %v120_v45  ;;  %v117_v10 = vmul.f32 %v837_v48, %v66_v38  ;;  %v325_v38 = vld [vmem:[%s940_s3 + $0x10] sm:$0xff]  ;;  %v327_v43 = vld [vmem:[%s940_s3 + $0x20] sm:$0xff] }
  0xa2   :  { %v306_v26 = vmul.f32 0.2, %v293_v24 }
  0xa4   :  { %v319_v29 = vmax.f32 %v293_v24, %v306_v26 }
  0xa6   :  { %v149_v30 = vpop.permute.xlu0 %148  ;;  %404 = vmatpush.msra.mxu0 %v319_v29  ;;  %623 = vmatpush.msra.mxu2 %v319_v29 }
  0xa7   :  { %624 = vmatpush.msra.mxu3 %v319_v29  ;;  %v262_v32 = vpop.permute.xlu1 %261  ;;  %v185_v54 = vmul.f32 %v835_v47, %v149_v30 }
  0xa8   :  { %v292_v33 = vadd.f32 %v262_v32, %v201_v31  ;;  %v61_v51 = vpop.permute.xlu2 %60 }
  0xa9   :  { %v198_v59 = vadd.f32 %v185_v54, %v119_v56  ;;  %v116_v22 = vmul.f32 %v837_v48, %v61_v51 }
  0xaa   :  { %v305_v35 = vmul.f32 0.2, %v292_v33 }
  0xac   :  { %v318_v37 = vmax.f32 %v292_v33, %v305_v35 }
  0xae   :  { %v145_v39 = vpop.permute.xlu0 %144  ;;  %405 = vmatpush.msra.mxu0 %v318_v37  ;;  %625 = vmatpush.msra.mxu2 %v318_v37 }
  0xaf   :  { %626 = vmatpush.msra.mxu3 %v318_v37  ;;  %v257_v41 = vpop.permute.xlu1 %256  ;;  %v184_v63 = vmul.f32 %v835_v47, %v145_v39  ;;  %v323_v37 = vld [vmem:[%s940_s3] sm:$0xff]  ;;  %v328_v39 = vld [vmem:[%s940_s3 + $0x28] sm:$0xff] }
  0xb0   :  { %v291_v42 = vadd.f32 %v257_v41, %v200_v40  ;;  %v56_v62 = vpop.permute.xlu2 %55  ;;  %v324_v40 = vld [vmem:[%s940_s3 + $0x8] sm:$0xff]  ;;  %v326_v41 = vld [vmem:[%s940_s3 + $0x18] sm:$0xff] }
  0xb1   :  { %v197_v4 = vadd.f32 %v184_v63, %v118_v1  ;;  %v115_v16 = vmul.f32 %v837_v48, %v56_v62 }
  0xb2   :  { %v304_v44 = vmul.f32 0.2, %v291_v42 }
  0xb4   :  { %v317_v46 = vmax.f32 %v291_v42, %v304_v44  ;;  %v329_v42 = vld [vmem:[%s940_s3 + $0x30] sm:$0x3] }
  0xb6   :  { %v141_v49 = vpop.permute.xlu0 %140  ;;  %406 = vmatpush.msra.mxu0 %v317_v46  ;;  %627 = vmatpush.msra.mxu2 %v317_v46 }
  0xb7   :  { %628 = vmatpush.msra.mxu3 %v317_v46  ;;  %v252_v52 = vpop.permute.xlu1 %251  ;;  %v183_v7 = vmul.f32 %v835_v47, %v141_v49 }
  0xb8   :  { %v290_v53 = vadd.f32 %v252_v52, %v199_v50  ;;  %v51_v9 = vpop.permute.xlu2 %50 }
  0xb9   :  { %v196_v14 = vadd.f32 %v183_v7, %v117_v10  ;;  %v114_v23 = vmul.f32 %v837_v48, %v51_v9 }
  0xba   :  { %v303_v55 = vmul.f32 0.2, %v290_v53 }
  0xbc   :  { %v316_v57 = vmax.f32 %v290_v53, %v303_v55 }
  0xbe   :  { %v137_v58 = vpop.permute.xlu0 %136  ;;  %407 = vmatpush.msra.mxu0 %v316_v57  ;;  %629 = vmatpush.msra.mxu2 %v316_v57 }
  0xbf   :  { %630 = vmatpush.msra.mxu3 %v316_v57  ;;  %v247_v60 = vpop.permute.xlu1 %246  ;;  %v182_v18 = vmul.f32 %v835_v47, %v137_v58 }
  0xc0   :  { %v289_v61 = vadd.f32 %v247_v60, %v198_v59  ;;  %v227_v25 = vpop.permute.xlu2 %226 }
  0xc1   :  { %v195_v27 = vadd.f32 %v182_v18, %v116_v22  ;;  %v451_v18 = vld [vmem:[%s941_s5 + $0x8] sm:$0xff] }
  0xc2   :  { %v302_v0 = vmul.f32 0.2, %v289_v61 }
  0xc4   :  { %v315_v2 = vmax.f32 %v289_v61, %v302_v0 }
  0xc6   :  { %v133_v3 = vpop.permute.xlu0 %132  ;;  %408 = vmatpush.msra.mxu0 %v315_v2  ;;  %631 = vmatpush.msra.mxu2 %v315_v2 }
  0xc7   :  { %632 = vmatpush.msra.mxu3 %v315_v2  ;;  %v242_v5 = vpop.permute.xlu1 %241  ;;  %v181_v12 = vmul.f32 %v835_v47, %v133_v3 }
  0xc8   :  { %v288_v6 = vadd.f32 %v242_v5, %v197_v4  ;;  %v365_v45 = vpop.permute.xlu2 %364 }
  0xc9   :  { %v194_v19 = vadd.f32 %v181_v12, %v115_v16 }
  0xca   :  { %v301_v8 = vmul.f32 0.2, %v288_v6 }
  0xcb   :  { %v285_v26 = vadd.f32 %v227_v25, %v194_v19  ;;  %v452_v19 = vld [vmem:[%s941_s5 + $0x10] sm:$0xff] }
  0xcc   :  { %v314_v11 = vmax.f32 %v288_v6, %v301_v8 }
  0xcd   :  { %v298_v34 = vmul.f32 0.2, %v285_v26 }
  0xce   :  { %v129_v13 = vpop.permute.xlu0 %128  ;;  %409 = vmatpush.msra.mxu0 %v314_v11  ;;  %633 = vmatpush.msra.mxu2 %v314_v11 }
  0xcf   :  { %634 = vmatpush.msra.mxu3 %v314_v11  ;;  %v237_v15 = vpop.permute.xlu1 %236  ;;  %v180_v20 = vmul.f32 %v835_v47, %v129_v13  ;;  %v311_v36 = vmax.f32 %v285_v26, %v298_v34 }
  0xd0   :  { %v287_v17 = vadd.f32 %v237_v15, %v196_v14  ;;  %v355_v56 = vpop.permute.xlu2 %354 }
  0xd1   :  { %v193_v28 = vadd.f32 %v180_v20, %v114_v23  ;;  %v453_v20 = vld [vmem:[%s941_s5 + $0x18] sm:$0x3f] }
  0xd2   :  { %v300_v21 = vmul.f32 0.2, %v287_v17 }
  0xd4   :  { %v313_v24 = vmax.f32 %v287_v17, %v300_v21  ;;  %v450_v17 = vld [vmem:[%s941_s5] sm:$0xff] }
  0xd6   :  { %410 = vmatpush.msra.mxu0 %v313_v24  ;;  %635 = vmatpush.msra.mxu2 %v313_v24 }
  0xd7   :  { %636 = vmatpush.msra.mxu3 %v313_v24  ;;  %v232_v29 = vpop.permute.xlu1 %231  ;;  %v222_v30 = vpop.permute.xlu0 %221 }
  0xd8   :  { %v286_v31 = vadd.f32 %v232_v29, %v195_v27  ;;  %v284_v32 = vadd.f32 %v222_v30, %v193_v28  ;;  %v340_v7 = vpop.permute.xlu2 %339 }
  0xda   :  { %v299_v33 = vmul.f32 0.2, %v286_v31  ;;  %v297_v35 = vmul.f32 0.2, %v284_v32 }
  0xdc   :  { %v312_v47 = vmax.f32 %v286_v31, %v299_v33  ;;  %v310_v48 = vmax.f32 %v284_v32, %v297_v35 }
  0xde   :  { %411 = vmatpush.msra.mxu0 %v312_v47  ;;  %637 = vmatpush.msra.mxu2 %v312_v47 }
  0xdf   :  { %638 = vmatpush.msra.mxu3 %v312_v47  ;;  %v370_v44 = vpop.permute.xlu1 %369  ;;  %v350_v60 = vpop.permute.xlu0 %349 }
  0xe0   :  { %412 = vmatpush.msra.mxu0 %v311_v36  ;;  %639 = vmatpush.msra.mxu2 %v311_v36  ;;  %v471_v26 = vpop.permute.xlu2 %470 }
  0xe1   :  { %640 = vmatpush.msra.mxu3 %v311_v36 }
  0xe2   :  { %413 = vmatpush.msra.mxu0 %v310_v48  ;;  %641 = vmatpush.msra.mxu2 %v310_v48 }
  0xe3   :  { %642 = vmatpush.msra.mxu3 %v310_v48  ;;  %604 = vmatmul.msk.f32.vlgmr.msra.gmra.mxu0 %vm372_vm1, %v323_v37 }
  0xe4   :  { %606 = vmatmul.msk.f32.vlgmr.msra.gmra.mxu2 %vm372_vm1, %v325_v38  ;;  %609 = vmatmul.msk.f32.vlgmr.msra.gmra.mxu3 %vm372_vm1, %v328_v39 }
  0xe7   :  { %v360_v51 = vpop.permute.xlu1 %359  ;;  %v461_v22 = vpop.permute.xlu0 %460 }
  0xe8   :  { %v544_v37 = vpop.permute.xlu2 %543 }
  0xeb   :  { %605 = vmatmul.msk.f32.gmra.mxu0 %vm372_vm1, %v324_v40 }
  0xec   :  { %607 = vmatmul.msk.f32.gmra.mxu2 %vm372_vm1, %v326_v41  ;;  %610 = vmatmul.msk.f32.gmra.mxu3 %vm372_vm1, %v329_v42 }
  0xef   :  { %v345_v3 = vpop.permute.xlu1 %344  ;;  %v476_v29 = vpop.permute.xlu0 %475 }
  0xf4   :  { %608 = vmatmul.msk.f32.gmra.mxu2 %vm372_vm1, %v327_v43 }
  0xf7   :  { %v466_v24 = vpop.permute.xlu1 %465  ;;  %v549_v40 = vpop.permute.xlu0 %548 }
  0xff   :  { %v539_v32 = vpop.permute.xlu1 %538 }
 0x160   :  { %v415_v50 = vpop.f32.mrf.mxu0 }
 0x161   :  { %v416_v8 = vadd.f32 %v415_v50, %v340_v7 }
 0x163   :  { %v436_v13 = vmul.f32 0.2, %v416_v8 }
 0x165   :  { %v443_v16 = vmax.f32 %v416_v8, %v436_v13 }
 0x167   :  { %v421_v46 = vpop.f32.mrf.mxu2  ;;  %v430_v49 = vpop.f32.mrf.mxu3 }
 0x168   :  { %v431_v52 = vadd.f32 %v430_v49, %v365_v45  ;;  %v418_v63 = vpop.f32.mrf.mxu0  ;;  %v422_v1 = vadd.f32 %v421_v46, %v350_v60  ;;  %v554_v45 = vpop.permute.xlu1 %553 }
 0x169   :  { %v419_v4 = vadd.f32 %v418_v63, %v345_v3 }
 0x16a   :  { %v441_v57 = vmul.f32 0.2, %v431_v52  ;;  %v438_v9 = vmul.f32 0.2, %v422_v1 }
 0x16b   :  { %v437_v11 = vmul.f32 0.2, %v419_v4 }
 0x16c   :  { %v448_v62 = vmax.f32 %v431_v52, %v441_v57  ;;  %v445_v14 = vmax.f32 %v422_v1, %v438_v9  ;;  %v575_v57 = vpop.permute.xlu2 %574 }
 0x16d   :  { %v444_v15 = vmax.f32 %v419_v4, %v437_v11 }
 0x16f   :  { %v424_v53 = vpop.f32.mrf.mxu2  ;;  %v433_v54 = vpop.f32.mrf.mxu3 }
 0x170   :  { %v434_v55 = vadd.f32 %v433_v54, %v370_v44  ;;  %v425_v61 = vadd.f32 %v424_v53, %v355_v56 }
 0x172   :  { %v442_v58 = vmul.f32 0.2, %v434_v55  ;;  %v439_v5 = vmul.f32 0.2, %v425_v61 }
 0x174   :  { %v449_v59 = vmax.f32 %v434_v55, %v442_v58  ;;  %v446_v12 = vmax.f32 %v425_v61, %v439_v5 }
 0x176   :  { %611 = vmatpush.msk.msra.mxu1 %vm491_vm2, %v449_v59  ;;  %v577_v59 = vperm.slane %v575_v57, 0 }
 0x177   :  { %v427_v0 = vpop.f32.mrf.mxu2 }
 0x178   :  { %v428_v2 = vadd.f32 %v427_v0, %v360_v51  ;;  %505 = vmatpush.msra.mxu1 %v448_v62 }
 0x17a   :  { %v440_v6 = vmul.f32 0.2, %v428_v2 }
 0x17c   :  { %v447_v10 = vmax.f32 %v428_v2, %v440_v6 }
 0x17e   :  { %506 = vmatpush.msra.mxu1 %v447_v10 }
 0x180   :  { %507 = vmatpush.msra.mxu1 %v446_v12 }
 0x182   :  { %508 = vmatpush.msra.mxu1 %v445_v14 }
 0x184   :  { %509 = vmatpush.msra.mxu1 %v444_v15 }
 0x186   :  { %510 = vmatpush.msra.mxu1 %v443_v16 }
 0x187   :  { %612 = vmatmul.msk.f32.vlgmr.msra.gmra.mxu1 %vm478_vm3, %v450_v17 }
 0x18f   :  { %613 = vmatmul.msk.f32.gmra.mxu1 %vm478_vm3, %v451_v18 }
 0x197   :  { %614 = vmatmul.msk.f32.gmra.mxu1 %vm478_vm3, %v452_v19 }
 0x19f   :  { %615 = vmatmul.msk.f32.gmra.mxu1 %vm478_vm3, %v453_v20 }
 0x204   :  { %v512_v21 = vpop.f32.mrf.mxu1 }
 0x205   :  { %v513_v27 = vadd.f32 %v512_v21, %v461_v22 }
 0x207   :  { %v524_v33 = vmul.f32 0.2, %v513_v27 }
 0x209   :  { %v528_v35 = vmax.f32 %v513_v27, %v524_v33 }
 0x20b   :  { %v556_v42 = vmul.f32 %v539_v32, %v528_v35 }
 0x20c   :  { %v515_v23 = vpop.f32.mrf.mxu1 }
 0x20d   :  { %v516_v25 = vadd.f32 %v515_v23, %v466_v24 }
 0x20f   :  { %v525_v31 = vmul.f32 0.2, %v516_v25 }
 0x211   :  { %v529_v47 = vmax.f32 %v516_v25, %v525_v31 }
 0x213   :  { %v557_v39 = vmul.f32 %v544_v37, %v529_v47 }
 0x214   :  { %v518_v28 = vpop.f32.mrf.mxu1 }
 0x215   :  { %v519_v30 = vadd.f32 %v518_v28, %v471_v26  ;;  %v560_v46 = vadd.f32 %v557_v39, %v556_v42 }
 0x217   :  { %v526_v34 = vmul.f32 0.2, %v519_v30 }
 0x219   :  { %v530_v36 = vmax.f32 %v519_v30, %v526_v34 }
 0x21b   :  { %v558_v43 = vmul.f32 %v549_v40, %v530_v36 }
 0x21c   :  { %v521_v48 = vpop.f32.mrf.mxu1 }
 0x21d   :  { %v522_v38 = vadd.f32 %v521_v48, %v476_v29  ;;  %v561_v50 = vadd.f32 %v560_v46, %v558_v43 }
 0x21f   :  { %v527_v41 = vmul.f32 0.2, %v522_v38 }
 0x221   :  { %v531_v44 = vmax.f32 %v522_v38, %v527_v41 }
 0x223   :  { %v559_v49 = vmul.f32 %v554_v45, %v531_v44 }
 0x225   :  { %v563_v51 = vsel %vm562_vm4, %v559_v49, 0.0 }
 0x226   :  { %v564_v52 = vadd.f32 %v563_v51, %v561_v50 }
 0x228   :  { %v565_v53 = vrot.slane %v564_v52, 4 }
 0x22a   :  { %v566_v54 = vadd.f32 %v565_v53, %v564_v52 }
 0x22c   :  { %v567_v55 = vrot.slane %v566_v54, 2 }
 0x22e   :  { %v568_v56 = vadd.f32 %v567_v55, %v566_v54 }
 0x230   :  { %v569_v58 = vrot.slane %v568_v56, 1 }
 0x232   :  { %v570_v60 = vadd.f32 %v569_v58, %v568_v56 }
 0x234   :  { %v578_v61 = vadd.f32 %v577_v59, %v570_v60 }
 0x236   :  { %v616_v62 = vmul.f32 -1.442695, %v578_v61 }
 0x238   :  { %654 = vpow2.f32 %v616_v62 }
 0x23e   :  { %v655_v63 = vpop.eup %654 }
 0x23f   :  { %v582_v0 = vadd.f32 1.0, %v655_v63 }
 0x241   :  { %656 = vrcp.f32 %v582_v0  ;;  %v594_v4 = vand.u32 2147483648, %v582_v0  ;;  %v592_v6 = vand.u32 2147483647, %v582_v0  ;;  %vm588_vm6 = vweird.f32 %v582_v0 }
 0x243   :  { %v595_v8 = vor.u32 1.1754944e-38, %v594_v4  ;;  %vm593_vm8 = vcmp.eq.f32.partialorder %v592_v6, 8.507059e+37 }
 0x247   :  { %v657_v1 = vpop.eup %656 }
 0x248   :  { %v584_v2 = vmul.f32 %v657_v1, %v582_v0  ;;  %vm589_vm5 = vweird.f32 %v657_v1 }
 0x249   :  { %vm590_vm7 = vmor %vm588_vm6, %vm589_vm5 }
 0x24a   :  { %v585_v3 = vsub.f32 1.0, %v584_v2 }
 0x24c   :  { %v586_v5 = vmul.f32 %v657_v1, %v585_v3 }
 0x24e   :  { %v587_v7 = vadd.f32 %v657_v1, %v586_v5 }
 0x250   :  { %v591_v9 = vsel %vm590_vm7, %v657_v1, %v587_v7 }
 0x251   :  { %v596_v10 = vsel %vm593_vm8, %v595_v8, %v591_v9 }
 0x252   :  { %598 = vst [vmem:[%s942_s9] sm:$0x1] %v596_v10 }

</bundles_post_ra>
